<compile_context>
chip_gen: v7x
topology: tpu7x:2x2x1
jax: 0.10.0
libtpu: 0.0.40
codegen_flags: <defaults>
</compile_context>

<pallas_src>
import jax
import jax.numpy as jnp
from jax.experimental import pallas as pl
from jax.experimental.pallas import tpu as pltpu


def _mish(y):
    # numerically stable softplus, then y * tanh(softplus(y))
    sp = jnp.maximum(y, 0.0) + jnp.log(1.0 + jnp.exp(-jnp.abs(y)))
    return y * jnp.tanh(sp)


# ------------------------- fused conv Pallas kernel -------------------------

def _make_conv_kernel(*, K, s, Ho, Wo, Cin, Cout, has_prologue, has_epilogue,
                      has_residual, mxu_dtype):
    n_phase = s * s

    def kernel(*refs):
        i = 0
        x_refs = refs[i:i + n_phase]; i += n_phase       # s*s x (Hps, Wps, Cin)
        w_ref = refs[i]; i += 1                          # (K*K, Cin, Cout)
        if has_prologue:
            si_ref, bi_ref = refs[i], refs[i + 1]; i += 2
        if has_epilogue:
            so_ref, bo_ref = refs[i], refs[i + 1]; i += 2
        if has_residual:
            r_ref = refs[i]; i += 1
        o_ref = refs[i]                                  # (Ho*Wo, Cout)

        if has_prologue:
            si = si_ref[...].reshape(1, 1, Cin)
            bi = bi_ref[...].reshape(1, 1, Cin)

        # Activate each spatial phase once (EUP transcendentals overlap MXU work).
        acts = []
        for p in range(n_phase):
            v = x_refs[p][...].astype(jnp.float32)       # (Hps, Wps, Cin)
            if has_prologue:
                v = _mish(v * si + bi)
            acts.append(v.astype(mxu_dtype))

        # K*K-tap accumulation on the MXU with an f32 accumulator.
        acc = jnp.zeros((Ho * Wo, Cout), jnp.float32)
        for kh in range(K):
            for kw in range(K):
                src = acts[(kh % s) * s + (kw % s)]
                a = src[kh // s:kh // s + Ho, kw // s:kw // s + Wo, :]
                a = a.reshape(Ho * Wo, Cin)
                wt = w_ref[kh * K + kw].astype(mxu_dtype)
                acc = acc + jnp.dot(a, wt, preferred_element_type=jnp.float32)

        out = acc
        if has_epilogue:
            out = _mish(out * so_ref[...] + bo_ref[...])
        if has_residual:
            out = out + r_ref[...].astype(jnp.float32)
        o_ref[...] = out.astype(o_ref.dtype)

    return kernel


def conv_bn_mish(x, w, *, stride, padding, prologue=None, epilogue=None,
                 residual=None, mxu_dtype=jnp.float32):
    """Fused NHWC conv (no bias).  x: (N,H,W,Cin), w: (K,K,Cin,Cout) HWIO.
    prologue/epilogue: optional (scale, shift) f32 per-channel pairs applying
    eval-mode PSBatchNorm(+alpha)+mish to the conv input / output.
    residual: optional NHWC tensor of the output shape, added before the store."""
    N, H, W, Cin = x.shape
    K = w.shape[0]
    Cout = w.shape[3]
    s, p = stride, padding
    Ho = (H + 2 * p - K) // s + 1
    Wo = (W + 2 * p - K) // s + 1

    # Spatial padding.  When a BN+mish prologue is fused, pad with the
    # per-channel value that maps to 0 AFTER the prologue (mish(0) == 0), so the
    # padded ring contributes nothing - identical to zero-padding the activated
    # tensor, as the PyTorch module does.
    if p > 0:
        cfg = ((0, 0), (p, p), (p, p), (0, 0))
        if prologue is not None:
            sc, sh = prologue
            safe = jnp.where(sc == 0, 1.0, sc)
            neutral = jnp.where(sc == 0, 0.0, -sh / safe).astype(x.dtype)
            xp = jnp.pad(x - neutral, cfg) + neutral
        else:
            xp = jnp.pad(x, cfg)
    else:
        xp = x
    Hp, Wp = H + 2 * p, W + 2 * p
    # Make the padded extent divisible by the stride (extra rows/cols are never
    # read by any valid tap).
    eh, ew = (-Hp) % s, (-Wp) % s
    if eh or ew:
        xp = jnp.pad(xp, ((0, 0), (0, eh), (0, ew), (0, 0)))
        Hp, Wp = Hp + eh, Wp + ew
    Hps, Wps = Hp // s, Wp // s
    assert (K - 1) // s + Ho <= Hps and (K - 1) // s + Wo <= Wps

    # Split into s*s spatial phases so every in-kernel tap slice is contiguous.
    phases = [xp[:, hr::s, wr::s, :].reshape(N * Hps, Wps, Cin)
              for hr in range(s) for wr in range(s)]
    w_r = w.reshape(K * K, Cin, Cout).astype(mxu_dtype)

    args = list(phases) + [w_r]
    in_specs = [pl.BlockSpec((Hps, Wps, Cin), lambda n: (n, 0, 0))
                for _ in range(s * s)]
    in_specs.append(pl.BlockSpec((K * K, Cin, Cout), lambda n: (0, 0, 0)))
    if prologue is not None:
        args += [prologue[0].reshape(1, Cin).astype(jnp.float32),
                 prologue[1].reshape(1, Cin).astype(jnp.float32)]
        in_specs += [pl.BlockSpec((1, Cin), lambda n: (0, 0))] * 2
    if epilogue is not None:
        args += [epilogue[0].reshape(1, Cout).astype(jnp.float32),
                 epilogue[1].reshape(1, Cout).astype(jnp.float32)]
        in_specs += [pl.BlockSpec((1, Cout), lambda n: (0, 0))] * 2
    if residual is not None:
        args.append(residual.reshape(N * Ho * Wo, Cout))
        in_specs.append(pl.BlockSpec((Ho * Wo, Cout), lambda n: (n, 0)))

    kernel = _make_conv_kernel(K=K, s=s, Ho=Ho, Wo=Wo, Cin=Cin, Cout=Cout,
                               has_prologue=prologue is not None,
                               has_epilogue=epilogue is not None,
                               has_residual=residual is not None,
                               mxu_dtype=mxu_dtype)
    out = pl.pallas_call(
        kernel,
        out_shape=jax.ShapeDtypeStruct((N * Ho * Wo, Cout), x.dtype),
        grid=(N,),
        in_specs=in_specs,
        out_specs=pl.BlockSpec((Ho * Wo, Cout), lambda n: (n, 0)),
        compiler_params=pltpu.CompilerParams(
            dimension_semantics=("parallel",),
            vmem_limit_bytes=48 * 1024 * 1024),
    )(*args)
    return out.reshape(N, Ho, Wo, Cout)


# --------------------------- BasicBlock forward ----------------------------

def basic_block_forward(x_nchw, params, *, stride, equal_in_out,
                        activate_before_residual, eps=1e-5, alpha=0.1,
                        mxu_dtype=jnp.float32):
    x = jnp.transpose(x_nchw, (0, 2, 3, 1))              # NCHW -> NHWC
    g1, b1, m1, v1 = params["bn1"]
    g2, b2, m2, v2 = params["bn2"]
    s1 = (g1 / jnp.sqrt(v1 + eps)).astype(jnp.float32)
    t1 = (b1 - m1 * s1 + alpha).astype(jnp.float32)
    s2 = (g2 / jnp.sqrt(v2 + eps)).astype(jnp.float32)
    t2 = (b2 - m2 * s2 + alpha).astype(jnp.float32)

    act1 = (s1, t1)
    if equal_in_out:
        conv1_pro, short_pro = act1, None                # conv1 sees relu1(bn1(x))
    elif activate_before_residual:
        conv1_pro, short_pro = act1, act1                # both convs see activated x
    else:
        # torch quirk: relu1(bn1(x)) is computed but conv1/shortcut consume the
        # raw x in this branch -- the activation is dead code, so skip it.
        conv1_pro, short_pro = None, None

    out = conv_bn_mish(x, params["conv1_w"], stride=stride, padding=1,
                       prologue=conv1_pro, epilogue=(s2, t2),
                       mxu_dtype=mxu_dtype)
    # TODO(synk): dropout path (drop_rate > 0) not implemented; this block uses
    # drop_rate=0.0 so F.dropout is the identity.
    if equal_in_out:
        residual = x
    else:
        residual = conv_bn_mish(x, params["convShortcut_w"], stride=stride,
                                padding=0, prologue=short_pro,
                                mxu_dtype=mxu_dtype)
    out = conv_bn_mish(out, params["conv2_w"], stride=1, padding=1,
                       residual=residual, mxu_dtype=mxu_dtype)
    return jnp.transpose(out, (0, 3, 1, 2))              # back to NCHW


# ----------------------- pure-JAX reference (check) ------------------------

def _mish_ref(x):
    sp = jnp.maximum(x, 0.0) + jnp.log(1.0 + jnp.exp(-jnp.abs(x)))
    return x * jnp.tanh(sp)


def _bn_ref(x, g, b, m, v, eps, alpha):
    return (x - m) / jnp.sqrt(v + eps) * g + b + alpha


def _conv_ref(x, w, stride, padding):
    return jax.lax.conv_general_dilated(
        x, w, (stride, stride), [(padding, padding)] * 2,
        dimension_numbers=("NHWC", "HWIO", "NHWC"))


def reference_forward(x_nchw, params, *, stride, equal_in_out,
                      activate_before_residual, eps=1e-5, alpha=0.1):
    x = jnp.transpose(x_nchw, (0, 2, 3, 1))
    g1, b1, m1, v1 = params["bn1"]
    g2, b2, m2, v2 = params["bn2"]
    if (not equal_in_out) and activate_before_residual:
        x = _mish_ref(_bn_ref(x, g1, b1, m1, v1, eps, alpha))
        out = x
    else:
        out = _mish_ref(_bn_ref(x, g1, b1, m1, v1, eps, alpha))
    out = _conv_ref(out if equal_in_out else x, params["conv1_w"], stride, 1)
    out = _mish_ref(_bn_ref(out, g2, b2, m2, v2, eps, alpha))
    res = x if equal_in_out else _conv_ref(x, params["convShortcut_w"], stride, 0)
    out = _conv_ref(out, params["conv2_w"], 1, 1) + res
    return jnp.transpose(out, (0, 3, 1, 2))


# ------------------------------ parameters ---------------------------------

def init_params(key, in_planes, out_planes):
    ks = jax.random.split(key, 11)
    p = {}
    p["bn1"] = (1.0 + 0.1 * jax.random.normal(ks[0], (in_planes,), jnp.float32),
                0.1 * jax.random.normal(ks[1], (in_planes,), jnp.float32),
                0.1 * jax.random.normal(ks[2], (in_planes,), jnp.float32),
                0.5 + jnp.abs(jax.random.normal(ks[3], (in_planes,), jnp.float32)))
    p["bn2"] = (1.0 + 0.1 * jax.random.normal(ks[4], (out_planes,), jnp.float32),
                0.1 * jax.random.normal(ks[5], (out_planes,), jnp.float32),
                0.1 * jax.random.normal(ks[6], (out_planes,), jnp.float32),
                0.5 + jnp.abs(jax.random.normal(ks[7], (out_planes,), jnp.float32)))
    # Conv weights stored directly in HWIO (equivalent to torch OIHW transposed).
    p["conv1_w"] = 0.1 * jax.random.normal(ks[8], (3, 3, in_planes, out_planes), jnp.float32)
    p["conv2_w"] = 0.1 * jax.random.normal(ks[9], (3, 3, out_planes, out_planes), jnp.float32)
    if in_planes != out_planes:
        p["convShortcut_w"] = 0.1 * jax.random.normal(
            ks[10], (1, 1, in_planes, out_planes), jnp.float32)
    return p


if __name__ == "__main__":
    key = jax.random.PRNGKey(0)
    kx, kpA, kpB, kpC = jax.random.split(key, 4)
    x = jax.random.normal(kx, (2, 4, 16, 16), jnp.float32)   # NCHW, like PyTorch

    # Config A: in=4 -> out=8, stride=2, 1x1 convShortcut, no pre-activation.
    pA = init_params(kpA, 4, 8)
    outA = basic_block_forward(x, pA, stride=2, equal_in_out=False,
                               activate_before_residual=False)
    refA = reference_forward(x, pA, stride=2, equal_in_out=False,
                             activate_before_residual=False)

    # Config B: in=out=4, stride=1, identity residual (bn1 prologue + bn2 epilogue
    # both fused into conv1; neutral padding path exercised).
    pB = init_params(kpB, 4, 4)
    outB = basic_block_forward(x, pB, stride=1, equal_in_out=True,
                               activate_before_residual=False)
    refB = reference_forward(x, pB, stride=1, equal_in_out=True,
                             activate_before_residual=False)

    # Config C: in=4 -> out=8, stride=2, activate_before_residual=True
    # (prologue fused into both conv1 and the 1x1 shortcut).
    pC = init_params(kpC, 4, 8)
    outC = basic_block_forward(x, pC, stride=2, equal_in_out=False,
                               activate_before_residual=True)
    refC = reference_forward(x, pC, stride=2, equal_in_out=False,
                             activate_before_residual=True)

    # bf16 MXU inputs (f32 accumulation), checked with a relative L2 bound.
    outB_bf16 = basic_block_forward(x, pB, stride=1, equal_in_out=True,
                                    activate_before_residual=False,
                                    mxu_dtype=jnp.bfloat16)

    jax.block_until_ready((outA, outB, outC, outB_bf16))
    assert outA.shape == (2, 8, 8, 8), outA.shape
    assert outB.shape == (2, 4, 16, 16), outB.shape
    assert outC.shape == (2, 8, 8, 8), outC.shape
    assert jnp.allclose(outA, refA, atol=2e-4, rtol=2e-4), \
        float(jnp.max(jnp.abs(outA - refA)))
    assert jnp.allclose(outB, refB, atol=2e-4, rtol=2e-4), \
        float(jnp.max(jnp.abs(outB - refB)))
    assert jnp.allclose(outC, refC, atol=2e-4, rtol=2e-4), \
        float(jnp.max(jnp.abs(outC - refC)))
    rel = float(jnp.sqrt(jnp.sum((outB_bf16 - refB) ** 2) / jnp.sum(refB ** 2)))
    assert rel < 2e-2, rel
    print("KERNEL_OK")
</pallas_src>

<mosaic_0001>
module attributes {stable_mosaic.version = 11 : i64} {
  func.func @kernel(%arg0: i32, %arg1: memref<9x9x4xf32, #tpu.memory_space<vmem>>, %arg2: memref<9x9x4xf32, #tpu.memory_space<vmem>>, %arg3: memref<9x9x4xf32, #tpu.memory_space<vmem>>, %arg4: memref<9x9x4xf32, #tpu.memory_space<vmem>>, %arg5: memref<9x4x8xf32, #tpu.memory_space<vmem>>, %arg6: memref<1x8xf32, #tpu.memory_space<vmem>>, %arg7: memref<1x8xf32, #tpu.memory_space<vmem>>, %arg8: memref<64x8xf32, #tpu.memory_space<vmem>>) attributes {dimension_semantics = [#tpu.dimension_semantics<parallel>], iteration_bounds = array<i64: 2>, scalar_prefetch = 0 : i64, scratch_operands = 0 : i64, tpu.core_type = #tpu.core_type<tc>, window_params = [{transform_indices = @transform_0, window_bounds = array<i64: 9, 9, 4>}, {transform_indices = @transform_1, window_bounds = array<i64: 9, 9, 4>}, {transform_indices = @transform_2, window_bounds = array<i64: 9, 9, 4>}, {transform_indices = @transform_3, window_bounds = array<i64: 9, 9, 4>}, {pipeline_mode = #tpu.pipeline_mode<synchronous>, transform_indices = @transform_4, window_bounds = array<i64: 9, 4, 8>}, {pipeline_mode = #tpu.pipeline_mode<synchronous>, transform_indices = @transform_5, window_bounds = array<i64: 1, 8>}, {pipeline_mode = #tpu.pipeline_mode<synchronous>, transform_indices = @transform_6, window_bounds = array<i64: 1, 8>}, {transform_indices = @transform_7, window_bounds = array<i64: 64, 8>}]} {
    %c0 = arith.constant 0 : index
    %c0_0 = arith.constant 0 : index
    %c0_1 = arith.constant 0 : index
    %0 = vector.load %arg1[%c0, %c0_0, %c0_1] : memref<9x9x4xf32, #tpu.memory_space<vmem>>, vector<9x9x4xf32>
    %c0_2 = arith.constant 0 : index
    %c0_3 = arith.constant 0 : index
    %c0_4 = arith.constant 0 : index
    %1 = vector.load %arg2[%c0_2, %c0_3, %c0_4] : memref<9x9x4xf32, #tpu.memory_space<vmem>>, vector<9x9x4xf32>
    %c0_5 = arith.constant 0 : index
    %c0_6 = arith.constant 0 : index
    %c0_7 = arith.constant 0 : index
    %2 = vector.load %arg3[%c0_5, %c0_6, %c0_7] : memref<9x9x4xf32, #tpu.memory_space<vmem>>, vector<9x9x4xf32>
    %c0_8 = arith.constant 0 : index
    %c0_9 = arith.constant 0 : index
    %c0_10 = arith.constant 0 : index
    %3 = vector.load %arg4[%c0_8, %c0_9, %c0_10] : memref<9x9x4xf32, #tpu.memory_space<vmem>>, vector<9x9x4xf32>
    %cst = arith.constant 0.000000e+00 : f32
    %4 = vector.broadcast %cst : f32 to vector<64x8xf32>
    %5 = vector.extract_strided_slice %0 {offsets = [0, 0, 0], sizes = [8, 8, 4], strides = [1, 1, 1]} : vector<9x9x4xf32> to vector<8x8x4xf32>
    %6 = vector.shape_cast %5 : vector<8x8x4xf32> to vector<64x4xf32>
    %c0_11 = arith.constant 0 : index
    %c0_12 = arith.constant 0 : index
    %c0_13 = arith.constant 0 : index
    %7 = vector.load %arg5[%c0_11, %c0_12, %c0_13] : memref<9x4x8xf32, #tpu.memory_space<vmem>>, vector<1x4x8xf32>
    %8 = vector.shape_cast %7 : vector<1x4x8xf32> to vector<4x8xf32>
    %cst_14 = arith.constant dense<0.000000e+00> : vector<64x8xf32>
    %9 = tpu.matmul %6, %8, %cst_14 {dimension_numbers = #tpu.dot_dimension_numbers<[1], [0], [0], [1], [0, 0, 1, 1], [], []>} : vector<64x4xf32>, vector<4x8xf32>, vector<64x8xf32> -> vector<64x8xf32>
    %10 = arith.addf %4, %9 : vector<64x8xf32>
    %11 = vector.extract_strided_slice %1 {offsets = [0, 0, 0], sizes = [8, 8, 4], strides = [1, 1, 1]} : vector<9x9x4xf32> to vector<8x8x4xf32>
    %12 = vector.shape_cast %11 : vector<8x8x4xf32> to vector<64x4xf32>
    %c1 = arith.constant 1 : index
    %c0_15 = arith.constant 0 : index
    %c0_16 = arith.constant 0 : index
    %13 = vector.load %arg5[%c1, %c0_15, %c0_16] : memref<9x4x8xf32, #tpu.memory_space<vmem>>, vector<1x4x8xf32>
    %14 = vector.shape_cast %13 : vector<1x4x8xf32> to vector<4x8xf32>
    %cst_17 = arith.constant dense<0.000000e+00> : vector<64x8xf32>
    %15 = tpu.matmul %12, %14, %cst_17 {dimension_numbers = #tpu.dot_dimension_numbers<[1], [0], [0], [1], [0, 0, 1, 1], [], []>} : vector<64x4xf32>, vector<4x8xf32>, vector<64x8xf32> -> vector<64x8xf32>
    %16 = arith.addf %10, %15 : vector<64x8xf32>
    %17 = vector.extract_strided_slice %0 {offsets = [0, 1, 0], sizes = [8, 8, 4], strides = [1, 1, 1]} : vector<9x9x4xf32> to vector<8x8x4xf32>
    %18 = vector.shape_cast %17 : vector<8x8x4xf32> to vector<64x4xf32>
    %c2 = arith.constant 2 : index
    %c0_18 = arith.constant 0 : index
    %c0_19 = arith.constant 0 : index
    %19 = vector.load %arg5[%c2, %c0_18, %c0_19] : memref<9x4x8xf32, #tpu.memory_space<vmem>>, vector<1x4x8xf32>
    %20 = vector.shape_cast %19 : vector<1x4x8xf32> to vector<4x8xf32>
    %cst_20 = arith.constant dense<0.000000e+00> : vector<64x8xf32>
    %21 = tpu.matmul %18, %20, %cst_20 {dimension_numbers = #tpu.dot_dimension_numbers<[1], [0], [0], [1], [0, 0, 1, 1], [], []>} : vector<64x4xf32>, vector<4x8xf32>, vector<64x8xf32> -> vector<64x8xf32>
    %22 = arith.addf %16, %21 : vector<64x8xf32>
    %23 = vector.extract_strided_slice %2 {offsets = [0, 0, 0], sizes = [8, 8, 4], strides = [1, 1, 1]} : vector<9x9x4xf32> to vector<8x8x4xf32>
    %24 = vector.shape_cast %23 : vector<8x8x4xf32> to vector<64x4xf32>
    %c3 = arith.constant 3 : index
    %c0_21 = arith.constant 0 : index
    %c0_22 = arith.constant 0 : index
    %25 = vector.load %arg5[%c3, %c0_21, %c0_22] : memref<9x4x8xf32, #tpu.memory_space<vmem>>, vector<1x4x8xf32>
    %26 = vector.shape_cast %25 : vector<1x4x8xf32> to vector<4x8xf32>
    %cst_23 = arith.constant dense<0.000000e+00> : vector<64x8xf32>
    %27 = tpu.matmul %24, %26, %cst_23 {dimension_numbers = #tpu.dot_dimension_numbers<[1], [0], [0], [1], [0, 0, 1, 1], [], []>} : vector<64x4xf32>, vector<4x8xf32>, vector<64x8xf32> -> vector<64x8xf32>
    %28 = arith.addf %22, %27 : vector<64x8xf32>
    %29 = vector.extract_strided_slice %3 {offsets = [0, 0, 0], sizes = [8, 8, 4], strides = [1, 1, 1]} : vector<9x9x4xf32> to vector<8x8x4xf32>
    %30 = vector.shape_cast %29 : vector<8x8x4xf32> to vector<64x4xf32>
    %c4 = arith.constant 4 : index
    %c0_24 = arith.constant 0 : index
    %c0_25 = arith.constant 0 : index
    %31 = vector.load %arg5[%c4, %c0_24, %c0_25] : memref<9x4x8xf32, #tpu.memory_space<vmem>>, vector<1x4x8xf32>
    %32 = vector.shape_cast %31 : vector<1x4x8xf32> to vector<4x8xf32>
    %cst_26 = arith.constant dense<0.000000e+00> : vector<64x8xf32>
    %33 = tpu.matmul %30, %32, %cst_26 {dimension_numbers = #tpu.dot_dimension_numbers<[1], [0], [0], [1], [0, 0, 1, 1], [], []>} : vector<64x4xf32>, vector<4x8xf32>, vector<64x8xf32> -> vector<64x8xf32>
    %34 = arith.addf %28, %33 : vector<64x8xf32>
    %35 = vector.extract_strided_slice %2 {offsets = [0, 1, 0], sizes = [8, 8, 4], strides = [1, 1, 1]} : vector<9x9x4xf32> to vector<8x8x4xf32>
    %36 = vector.shape_cast %35 : vector<8x8x4xf32> to vector<64x4xf32>
    %c5 = arith.constant 5 : index
    %c0_27 = arith.constant 0 : index
    %c0_28 = arith.constant 0 : index
    %37 = vector.load %arg5[%c5, %c0_27, %c0_28] : memref<9x4x8xf32, #tpu.memory_space<vmem>>, vector<1x4x8xf32>
    %38 = vector.shape_cast %37 : vector<1x4x8xf32> to vector<4x8xf32>
    %cst_29 = arith.constant dense<0.000000e+00> : vector<64x8xf32>
    %39 = tpu.matmul %36, %38, %cst_29 {dimension_numbers = #tpu.dot_dimension_numbers<[1], [0], [0], [1], [0, 0, 1, 1], [], []>} : vector<64x4xf32>, vector<4x8xf32>, vector<64x8xf32> -> vector<64x8xf32>
    %40 = arith.addf %34, %39 : vector<64x8xf32>
    %41 = vector.extract_strided_slice %0 {offsets = [1, 0, 0], sizes = [8, 8, 4], strides = [1, 1, 1]} : vector<9x9x4xf32> to vector<8x8x4xf32>
    %42 = vector.shape_cast %41 : vector<8x8x4xf32> to vector<64x4xf32>
    %c6 = arith.constant 6 : index
    %c0_30 = arith.constant 0 : index
    %c0_31 = arith.constant 0 : index
    %43 = vector.load %arg5[%c6, %c0_30, %c0_31] : memref<9x4x8xf32, #tpu.memory_space<vmem>>, vector<1x4x8xf32>
    %44 = vector.shape_cast %43 : vector<1x4x8xf32> to vector<4x8xf32>
    %cst_32 = arith.constant dense<0.000000e+00> : vector<64x8xf32>
    %45 = tpu.matmul %42, %44, %cst_32 {dimension_numbers = #tpu.dot_dimension_numbers<[1], [0], [0], [1], [0, 0, 1, 1], [], []>} : vector<64x4xf32>, vector<4x8xf32>, vector<64x8xf32> -> vector<64x8xf32>
    %46 = arith.addf %40, %45 : vector<64x8xf32>
    %47 = vector.extract_strided_slice %1 {offsets = [1, 0, 0], sizes = [8, 8, 4], strides = [1, 1, 1]} : vector<9x9x4xf32> to vector<8x8x4xf32>
    %48 = vector.shape_cast %47 : vector<8x8x4xf32> to vector<64x4xf32>
    %c7 = arith.constant 7 : index
    %c0_33 = arith.constant 0 : index
    %c0_34 = arith.constant 0 : index
    %49 = vector.load %arg5[%c7, %c0_33, %c0_34] : memref<9x4x8xf32, #tpu.memory_space<vmem>>, vector<1x4x8xf32>
    %50 = vector.shape_cast %49 : vector<1x4x8xf32> to vector<4x8xf32>
    %cst_35 = arith.constant dense<0.000000e+00> : vector<64x8xf32>
    %51 = tpu.matmul %48, %50, %cst_35 {dimension_numbers = #tpu.dot_dimension_numbers<[1], [0], [0], [1], [0, 0, 1, 1], [], []>} : vector<64x4xf32>, vector<4x8xf32>, vector<64x8xf32> -> vector<64x8xf32>
    %52 = arith.addf %46, %51 : vector<64x8xf32>
    %53 = vector.extract_strided_slice %0 {offsets = [1, 1, 0], sizes = [8, 8, 4], strides = [1, 1, 1]} : vector<9x9x4xf32> to vector<8x8x4xf32>
    %54 = vector.shape_cast %53 : vector<8x8x4xf32> to vector<64x4xf32>
    %c8 = arith.constant 8 : index
    %c0_36 = arith.constant 0 : index
    %c0_37 = arith.constant 0 : index
    %55 = vector.load %arg5[%c8, %c0_36, %c0_37] : memref<9x4x8xf32, #tpu.memory_space<vmem>>, vector<1x4x8xf32>
    %56 = vector.shape_cast %55 : vector<1x4x8xf32> to vector<4x8xf32>
    %cst_38 = arith.constant dense<0.000000e+00> : vector<64x8xf32>
    %57 = tpu.matmul %54, %56, %cst_38 {dimension_numbers = #tpu.dot_dimension_numbers<[1], [0], [0], [1], [0, 0, 1, 1], [], []>} : vector<64x4xf32>, vector<4x8xf32>, vector<64x8xf32> -> vector<64x8xf32>
    %58 = arith.addf %52, %57 : vector<64x8xf32>
    %c0_39 = arith.constant 0 : index
    %c0_40 = arith.constant 0 : index
    %59 = vector.load %arg6[%c0_39, %c0_40] : memref<1x8xf32, #tpu.memory_space<vmem>>, vector<1x8xf32>
    %60 = vector.broadcast %59 : vector<1x8xf32> to vector<64x8xf32>
    %61 = arith.mulf %58, %60 : vector<64x8xf32>
    %c0_41 = arith.constant 0 : index
    %c0_42 = arith.constant 0 : index
    %62 = vector.load %arg7[%c0_41, %c0_42] : memref<1x8xf32, #tpu.memory_space<vmem>>, vector<1x8xf32>
    %63 = vector.broadcast %62 : vector<1x8xf32> to vector<64x8xf32>
    %64 = arith.addf %61, %63 : vector<64x8xf32>
    %cst_43 = arith.constant 0.000000e+00 : f32
    %65 = vector.broadcast %cst_43 : f32 to vector<64x8xf32>
    %66 = arith.maximumf %64, %65 : vector<64x8xf32>
    %67 = math.absf %64 : vector<64x8xf32>
    %cst_44 = arith.constant 0.000000e+00 : f32
    %68 = vector.broadcast %cst_44 : f32 to vector<64x8xf32>
    %69 = arith.subf %68, %67 : vector<64x8xf32>
    %70 = math.exp %69 : vector<64x8xf32>
    %cst_45 = arith.constant 1.000000e+00 : f32
    %71 = vector.broadcast %cst_45 : f32 to vector<64x8xf32>
    %72 = arith.addf %71, %70 : vector<64x8xf32>
    %73 = math.log %72 : vector<64x8xf32>
    %74 = arith.addf %66, %73 : vector<64x8xf32>
    %75 = math.tanh %74 : vector<64x8xf32>
    %76 = arith.mulf %64, %75 : vector<64x8xf32>
    %c0_46 = arith.constant 0 : index
    %c0_47 = arith.constant 0 : index
    %77 = vector.load %arg8[%c0_46, %c0_47] : memref<64x8xf32, #tpu.memory_space<vmem>>, vector<64x8xf32>
    tpu.vector_store %arg8[%c0_46, %c0_47], %76 {strides = array<i32>} : memref<64x8xf32, #tpu.memory_space<vmem>>, vector<64x8xf32>,
    return
  }
  func.func @transform_0(%arg0: i32) -> (i32, i32, i32) {
    %c0_i32 = arith.constant 0 : i32
    %c0_i32_0 = arith.constant 0 : i32
    %c0_i32_1 = arith.constant 0 : i32
    return %arg0, %c0_i32, %c0_i32_0 : i32, i32, i32
  }
  func.func @transform_1(%arg0: i32) -> (i32, i32, i32) {
    %c0_i32 = arith.constant 0 : i32
    %c0_i32_0 = arith.constant 0 : i32
    %c0_i32_1 = arith.constant 0 : i32
    return %arg0, %c0_i32, %c0_i32_0 : i32, i32, i32
  }
  func.func @transform_2(%arg0: i32) -> (i32, i32, i32) {
    %c0_i32 = arith.constant 0 : i32
    %c0_i32_0 = arith.constant 0 : i32
    %c0_i32_1 = arith.constant 0 : i32
    return %arg0, %c0_i32, %c0_i32_0 : i32, i32, i32
  }
  func.func @transform_3(%arg0: i32) -> (i32, i32, i32) {
    %c0_i32 = arith.constant 0 : i32
    %c0_i32_0 = arith.constant 0 : i32
    %c0_i32_1 = arith.constant 0 : i32
    return %arg0, %c0_i32, %c0_i32_0 : i32, i32, i32
  }
  func.func @transform_4(%arg0: i32) -> (i32, i32, i32) {
    %c0_i32 = arith.constant 0 : i32
    %c0_i32_0 = arith.constant 0 : i32
    %c0_i32_1 = arith.constant 0 : i32
    %c0_i32_2 = arith.constant 0 : i32
    return %c0_i32, %c0_i32_0, %c0_i32_1 : i32, i32, i32
  }
  func.func @transform_5(%arg0: i32) -> (i32, i32) {
    %c0_i32 = arith.constant 0 : i32
    %c0_i32_0 = arith.constant 0 : i32
    %c0_i32_1 = arith.constant 0 : i32
    return %c0_i32, %c0_i32_0 : i32, i32
  }
  func.func @transform_6(%arg0: i32) -> (i32, i32) {
    %c0_i32 = arith.constant 0 : i32
    %c0_i32_0 = arith.constant 0 : i32
    %c0_i32_1 = arith.constant 0 : i32
    return %c0_i32, %c0_i32_0 : i32, i32
  }
  func.func @transform_7(%arg0: i32) -> (i32, i32) {
    %c0_i32 = arith.constant 0 : i32
    %c0_i32_0 = arith.constant 0 : i32
    return %arg0, %c0_i32 : i32, i32
  }
}

</mosaic_0001>

<bundles_post_ra>
// kernel: tpu_custom_call.1
= control target key start
LH: loop header
LB: loop body
LE: loop exit
PB: predicated region body
PF: predicated region fallthrough
CT: control target
= control target key end

     0   :  { %s2371_s24 = smov 0   ;;  %s2736_s0 = inlined_call_operand.vmem [shape: f32[18,9,4], index: 0, kind: input, shape index: {}]   ;;  %s2737_s1 = inlined_call_operand.vmem [shape: f32[18,9,4], index: 1, kind: input, shape index: {}]   ;;  %s2738_s2 = inlined_call_operand.vmem [shape: f32[18,9,4], index: 2, kind: input, shape index: {}]   ;;  %s2739_s3 = inlined_call_operand.vmem [shape: f32[18,9,4], index: 3, kind: input, shape index: {}]   ;;  %s2740_s4 = inlined_call_operand.vmem [shape: f32[9,4,8], index: 4, kind: input, shape index: {}]   ;;  %s2741_s5 = inlined_call_operand.vmem [shape: f32[1,8], index: 5, kind: input, shape index: {}]   ;;  %s2742_s6 = inlined_call_operand.vmem [shape: f32[1,8], index: 6, kind: input, shape index: {}]   ;;  %s2743_s7 = inlined_call_operand.vmem [shape: f32[128,8], index: 7, kind: output, shape index: {}]  }
   0x1 LB: > { %s1882_s25 = sadd.s32 4294967295, %s2329_s24   ;;  %p1886_p0 = scmp.ge.s32.totalorder %s2329_s24, 1  ;;  %s2329_s24 = sphi %s2371_s24, %s17_s24  }
   0x2   : > { %p275_p1 = scmp.lt.s32.totalorder %s2329_s24, 3 }
   0x4   : > { %p276_p2 = pnand %p1886_p0, %p275_p1 }
   0x5   : > { %v1897_v0 = vld [vmem:[%s2740_s4 + $0x4] sm:$0xf] (!%p276_p2)  ;;  %vm439_vm0 = vcmask (!%p276_p2), 1043456   ;;  %v2385_v1 = vld [vmem:[%s2740_s4 + $0x10] sm:$0xf] (!%p276_p2)  ;;  %s326_s30 = smul.u32 (!%p276_p2), 9, %s1882_s25 }
   0x6   : > { %279 = sbr.rel (%p276_p2) target bundleno = 358 (0x166), region = 48  ;;  %2075 = vmatprep.subr.msk.mxu1 (!%p276_p2), %vm439_vm0, %v1897_v0  ;;  %2131 = vmatprep.subr.msk.mxu0 (!%p276_p2), %vm439_vm0, %v2385_v1  ;;  %v411_v2 = vld [vmem:[%s2740_s4] sm:$0xf] (!%p276_p2)  ;;  %v1946_v3 = vld [vmem:[%s2740_s4 + $0x14] sm:$0xf] (!%p276_p2)  ;;  %vm414_vm1 = vcmask (!%p276_p2), 31744  }
   0x7   : > { %2076 = vmatpush3.msk.msra.mxu1 (!%p276_p2), %vm439_vm0, %v1897_v0  ;;  %2132 = vmatpush3.msk.msra.mxu0 (!%p276_p2), %vm439_vm0, %v2385_v1  ;;  %p327_p3 = scmp.lt.s32.totalorder (!%p276_p2), %s326_s30, 17  ;;  %v1956_v6 = vld [vmem:[%s2740_s4 + $0x18] sm:$0xf] (!%p276_p2)  ;;  %v2446_v12 = vld [vmem:[%s2740_s4 + $0x8] sm:$0xf] (!%p276_p2)  ;;  %vm688_vm2 = vcmask (!%p276_p2), 1046528  }
   0x8   : > { %2089 = vmatprep.subr.msk.mxu1 (!%p276_p2), %vm439_vm0, %v411_v2  ;;  %2145 = vmatprep.subr.msk.mxu0 (!%p276_p2), %vm439_vm0, %v1946_v3  ;;  %v1966_v44 = vld [vmem:[%s2740_s4 + $0x1c] sm:$0xf] (!%p276_p2)  ;;  %v1926_v61 = vld [vmem:[%s2740_s4 + $0xc] sm:$0xf] (!%p276_p2)  ;;  %vm1781_vm3 = vcmask (!%p276_p2), 64512  }
   0xd   : > { %s2745_s30 = smov (!%p327_p3, %s326_s30), 17 }
   0xe   : > { %s2403_s12 = sshll.u32 %s2745_s30, 4 }
   0xf   : > { %s2409_s15 = scalar_lea.vmem %s2737_s1, %s2403_s12  ;;  %s2415_s18 = scalar_lea.vmem %s2738_s2, %s2403_s12 }
  0x10   : > { %v378_v4 = vld [vmem:[%s2409_s15] sm:$0xff]  ;;  %s2422_s21 = scalar_lea.vmem %s2739_s3, %s2403_s12  ;;  %v2425_v5 = vld [vmem:[%s2409_s15 + $0x10] sm:$0xff]  ;;  %v388_v15 = vld [vmem:[%s2415_s18 + $0x8] sm:$0x1]  ;;  %s2503_s30 = scalar_lea.vmem %s2736_s0, %s2403_s12 }
  0x11   : > { %2077 = vmatprep.mubr.msk.f32.mxu1 %vm414_vm1, %v378_v4  ;;  %v403_v7 = vld [vmem:[%s2422_s21] sm:$0xff]  ;;  %v404_v8 = vld [vmem:[%s2422_s21 + $0x10] sm:$0xff]  ;;  %v1140_v18 = vrot.slane %v388_v15, 1  ;;  %v390_v20 = vld [vmem:[%s2415_s18 + $0x18] sm:$0x1] }
  0x12   : > { %v2434_v9 = vld [vmem:[%s2409_s15 + $0x20] sm:$0xff]  ;;  %2133 = vmatprep.mubr.msk.f32.mxu0 %vm414_vm1, %v403_v7  ;;  %2078 = vmatmul.mubr.msk.f32.vlgmr.msra.gmra.mrb[0].mxu1 %vm414_vm1, %v2425_v5  ;;  %v2441_v11 = vld [vmem:[%s2409_s15 + $0x30] sm:$0xff]  ;;  %v1143_v22 = vrot.slane %v390_v20, 1  ;;  %v392_v24 = vld [vmem:[%s2415_s18 + $0x28] sm:$0x1] }
  0x13   : > { %v405_v10 = vld [vmem:[%s2422_s21 + $0x20] sm:$0xff]  ;;  %2090 = vmatpush3.msk.msra.mxu1 %vm439_vm0, %v411_v2  ;;  %2134 = vmatmul.mubr.msk.f32.vlgmr.msra.gmra.mrb[0].mxu0 %vm414_vm1, %v404_v8  ;;  %v406_v13 = vld [vmem:[%s2422_s21 + $0x30] sm:$0xff]  ;;  %v1146_v27 = vrot.slane %v392_v24, 1  ;;  %v394_v29 = vld [vmem:[%s2415_s18 + $0x38] sm:$0x1] }
  0x14   : > { %v2452_v14 = vld [vmem:[%s2415_s18] sm:$0xff]  ;;  %2146 = vmatpush3.msk.msra.mxu0 %vm439_vm0, %v1946_v3  ;;  %2080 = vmatprep.mubr.msk.f32.mxu1 %vm414_vm1, %v2434_v9  ;;  %v2463_v19 = vld [vmem:[%s2415_s18 + $0x10] sm:$0xff]  ;;  %v396_v32 = vld [vmem:[%s2415_s18 + $0x48] sm:$0x1]  ;;  %v1149_v36 = vrot.slane %v394_v29, 1 }
  0x15   : > { %v2459_v16 = vld [vmem:[%s2409_s15 + $0x40] sm:$0xff]  ;;  %v1139_v17 = vrot.slane %v2452_v14, 1  ;;  %2136 = vmatprep.mubr.msk.f32.mxu0 %vm414_vm1, %v405_v10  ;;  %2159 = vmatprep.subr.msk.mxu0 %vm439_vm0, %v1956_v6  ;;  %v1142_v21 = vrot.slane %v2463_v19, 1  ;;  %v2478_v28 = vld [vmem:[%s2415_s18 + $0x30] sm:$0xff]  ;;  %v1152_v39 = vrot.slane %v396_v32, 1 }
  0x16   : > { %v2470_v23 = vld [vmem:[%s2415_s18 + $0x20] sm:$0xff]  ;;  %2081 = vmatmul.mubr.msk.f32.gmra.mrb[2].mxu1 %vm414_vm1, %v2441_v11  ;;  %2103 = vmatprep.subr.msk.mxu1 %vm439_vm0, %v2446_v12  ;;  %v2487_v30 = vld [vmem:[%s2409_s15 + $0x50] sm:$0xff]  ;;  %v1148_v35 = vrot.slane %v2478_v28, 1  ;;  %v398_v41 = vld [vmem:[%s2415_s18 + $0x58] sm:$0x1] }
  0x17   : > { %v1141_v25 = vsel %vm688_vm2, %v1139_v17, %v1140_v18  ;;  %v1145_v26 = vrot.slane %v2470_v23, 1  ;;  %2137 = vmatmul.mubr.msk.f32.gmra.mrb[2].mxu0 %vm414_vm1, %v406_v13  ;;  %2083 = vmatprep.mubr.msk.f32.mxu1 %vm414_vm1, %v2459_v16  ;;  %v2490_v31 = vld [vmem:[%s2415_s18 + $0x40] sm:$0xff]  ;;  %v1144_v33 = vsel %vm688_vm2, %v1142_v21, %v1143_v22  ;;  %v2508_v40 = vld [vmem:[%s2415_s18 + $0x50] sm:$0xff]  ;;  %v400_v43 = vld [vmem:[%s2415_s18 + $0x68] sm:$0x1]  ;;  %v1155_v49 = vrot.slane %v398_v41, 1 }
  0x18   : > { %2147 = vmatprep.mubr.msk.f32.mxu0 %vm414_vm1, %v1141_v25  ;;  %v2496_v34 = vld [vmem:[%s2409_s15 + $0x60] sm:$0xff]  ;;  %v1151_v38 = vrot.slane %v2490_v31, 1  ;;  %v2524_v45 = vld [vmem:[%s2409_s15 + $0x70] sm:$0xff]  ;;  %v1150_v46 = vsel %vm688_vm2, %v1148_v35, %v1149_v36  ;;  %v1154_v48 = vrot.slane %v2508_v40, 1  ;;  %v1158_v52 = vrot.slane %v400_v43, 1 }
  0x19   : > { %v1147_v37 = vsel %vm688_vm2, %v1145_v26, %v1146_v27  ;;  %v2514_v42 = vld [vmem:[%s2415_s18 + $0x60] sm:$0xff]  ;;  %v2534_v53 = vld [vmem:[%s2415_s18 + $0x70] sm:$0xff]  ;;  %v402_v54 = vld [vmem:[%s2415_s18 + $0x78] sm:$0x1]  ;;  %s1895_s18 = sshll.u32 %s1882_s25, 3 }
  0x1a   : > { %2084 = vmatmul.mubr.msk.f32.gmra.mrb[4].mxu1 %vm414_vm1, %v2487_v30  ;;  %v360_v47 = vld [vmem:[%s2503_s30] sm:$0xff]  ;;  %v1153_v50 = vsel %vm688_vm2, %v1151_v38, %v1152_v39  ;;  %v1157_v51 = vrot.slane %v2514_v42, 1  ;;  %v362_v55 = vld [vmem:[%s2503_s30 + $0x10] sm:$0xff]  ;;  %v1156_v56 = vsel %vm688_vm2, %v1154_v48, %v1155_v49  ;;  %v1160_v57 = vrot.slane %v2534_v53, 1  ;;  %v361_v2 = vld [vmem:[%s2503_s30 + $0x8] sm:$0x1] }
  0x1b   : > { %2148 = vmatmul.mubr.msk.f32.vlgmr.msra.gmra.mrb[0].mxu0 %vm414_vm1, %v1144_v33  ;;  %2086 = vmatprep.mubr.msk.f32.mxu1 %vm414_vm1, %v2496_v34  ;;  %v1161_v58 = vrot.slane %v402_v54, 1  ;;  %v364_v59 = vld [vmem:[%s2503_s30 + $0x20] sm:$0xff]  ;;  %v366_v62 = vld [vmem:[%s2503_s30 + $0x30] sm:$0xff]  ;;  %v689_v4 = vrot.slane %v360_v47, 1  ;;  %v690_v7 = vrot.slane %v361_v2, 1  ;;  %v692_v13 = vrot.slane %v362_v55, 1 }
  0x1c   : > { %2160 = vmatpush3.msk.msra.mxu0 %vm439_vm0, %v1956_v6  ;;  %2150 = vmatprep.mubr.msk.f32.mxu0 %vm414_vm1, %v1147_v37  ;;  %v1159_v60 = vsel %vm688_vm2, %v1157_v51, %v1158_v52  ;;  %v368_v0 = vld [vmem:[%s2503_s30 + $0x40] sm:$0xff]  ;;  %v370_v3 = vld [vmem:[%s2503_s30 + $0x50] sm:$0xff]  ;;  %v363_v8 = vld [vmem:[%s2503_s30 + $0x18] sm:$0x1]  ;;  %v695_v21 = vrot.slane %v364_v59, 1  ;;  %v698_v25 = vrot.slane %v366_v62, 1 }
  0x1d   : > { %2173 = vmatprep.subr.msk.mxu0 %vm439_vm0, %v1966_v44  ;;  %v1162_v63 = vsel %vm688_vm2, %v1160_v57, %v1161_v58  ;;  %v372_v6 = vld [vmem:[%s2503_s30 + $0x60] sm:$0xff]  ;;  %v365_v10 = vld [vmem:[%s2503_s30 + $0x28] sm:$0x1]  ;;  %v374_v15 = vld [vmem:[%s2503_s30 + $0x70] sm:$0xff]  ;;  %v693_v17 = vrot.slane %v363_v8, 1  ;;  %v691_v18 = vsel %vm688_vm2, %v689_v4, %v690_v7  ;;  %v701_v29 = vrot.slane %v368_v0, 1 }
  0x1e   : > { %2087 = vmatmul.mubr.msk.f32.gmra.mrb[6].mxu1 %vm414_vm1, %v2524_v45  ;;  %v367_v20 = vld [vmem:[%s2503_s30 + $0x38] sm:$0x1]  ;;  %v696_v22 = vrot.slane %v365_v10, 1  ;;  %v369_v24 = vld [vmem:[%s2503_s30 + $0x48] sm:$0x1]  ;;  %v704_v37 = vrot.slane %v370_v3, 1 }
  0x1f   : > { %2151 = vmatmul.mubr.msk.f32.gmra.mrb[2].mxu0 %vm414_vm1, %v1150_v46  ;;  %2091 = vmatprep.mubr.msk.f32.mxu1 %vm414_vm1, %v360_v47  ;;  %v694_v26 = vsel %vm688_vm2, %v692_v13, %v693_v17  ;;  %v699_v27 = vrot.slane %v367_v20, 1  ;;  %v702_v32 = vrot.slane %v369_v24, 1  ;;  %v371_v33 = vld [vmem:[%s2503_s30 + $0x58] sm:$0x1]  ;;  %v373_v36 = vld [vmem:[%s2503_s30 + $0x68] sm:$0x1] }
  0x20   : > { %2153 = vmatprep.mubr.msk.f32.mxu0 %vm414_vm1, %v1153_v50  ;;  %v697_v35 = vsel %vm688_vm2, %v695_v21, %v696_v22  ;;  %v705_v39 = vrot.slane %v371_v33, 1  ;;  %v707_v41 = vrot.slane %v372_v6, 1  ;;  %v376_v43 = vld [vmem:[%s2503_s30 + $0x80] sm:$0xff]  ;;  %v708_v46 = vrot.slane %v373_v36, 1  ;;  %v375_v47 = vld [vmem:[%s2503_s30 + $0x78] sm:$0x1] }
  0x21   : > { %v700_v38 = vsel %vm688_vm2, %v698_v25, %v699_v27  ;;  %v710_v48 = vrot.slane %v374_v15, 1  ;;  %v711_v50 = vrot.slane %v375_v47, 1  ;;  %p355_p4 = scmp.lt.s32.totalorder %s1895_s18, 15 }
  0x22   : > { %2092 = vmatmul.mubr.msk.f32.vlgmr.msra.gmra.mrb[0].mxu1 %vm414_vm1, %v362_v55  ;;  %v706_v49 = vsel %vm688_vm2, %v704_v37, %v705_v39  ;;  %v709_v51 = vsel %vm688_vm2, %v707_v41, %v708_v46 }
  0x23   : > { %2104 = vmatpush3.msk.msra.mxu1 %vm439_vm0, %v2446_v12  ;;  %2154 = vmatmul.mubr.msk.f32.gmra.mrb[4].mxu0 %vm414_vm1, %v1156_v56  ;;  %v1976_v12 = vld [vmem:[%s2740_s4 + $0x20] sm:$0xf]  ;;  %v712_v52 = vsel %vm688_vm2, %v710_v48, %v711_v50  ;;  %s2747_s18 = smov (!%p355_p4, %s1895_s18), 15 }
  0x24   : > { %2094 = vmatprep.mubr.msk.f32.mxu1 %vm414_vm1, %v364_v59  ;;  %2156 = vmatprep.mubr.msk.f32.mxu0 %vm414_vm1, %v1159_v60  ;;  %s1896_s25 = sshll.u32 %s2747_s18, 3 }
  0x25   : > { %2117 = vmatprep.subr.msk.mxu1 %vm439_vm0, %v1926_v61 }
  0x26   : > { %2095 = vmatmul.mubr.msk.f32.gmra.mrb[2].mxu1 %vm414_vm1, %v366_v62 }
  0x27   : > { %2157 = vmatmul.mubr.msk.f32.gmra.mrb[6].mxu0 %vm414_vm1, %v1162_v63  ;;  %2097 = vmatprep.mubr.msk.f32.mxu1 %vm414_vm1, %v368_v0 }
  0x28   : > { %2161 = vmatprep.mubr.msk.f32.mxu0 %vm414_vm1, %v362_v55  ;;  %v1987_v55 = vld [vmem:[%s2742_s6] ss:$0 sm:$0xff] }
  0x2a   : > { %2098 = vmatmul.mubr.msk.f32.gmra.mrb[4].mxu1 %vm414_vm1, %v370_v3 }
  0x2b   : > { %2162 = vmatmul.mubr.msk.f32.vlgmr.msra.gmra.mrb[0].mxu0 %vm414_vm1, %v364_v59  ;;  %2100 = vmatprep.mubr.msk.f32.mxu1 %vm414_vm1, %v372_v6 }
  0x2c   : > { %2174 = vmatpush3.msk.msra.mxu0 %vm439_vm0, %v1966_v44  ;;  %2164 = vmatprep.mubr.msk.f32.mxu0 %vm414_vm1, %v366_v62  ;;  %v703_v44 = vsel %vm688_vm2, %v701_v29, %v702_v32 }
  0x2d   : > { %2187 = vmatprep.subr.msk.mxu0 %vm439_vm0, %v1976_v12 }
  0x2e   : > { %2101 = vmatmul.mubr.msk.f32.gmra.mrb[6].mxu1 %vm414_vm1, %v374_v15 }
  0x2f   : > { %2165 = vmatmul.mubr.msk.f32.gmra.mrb[2].mxu0 %vm414_vm1, %v368_v0  ;;  %2105 = vmatprep.mubr.msk.f32.mxu1 %vm414_vm1, %v691_v18 }
  0x30   : > { %2167 = vmatprep.mubr.msk.f32.mxu0 %vm414_vm1, %v370_v3 }
  0x32   : > { %2106 = vmatmul.mubr.msk.f32.vlgmr.msra.gmra.mrb[0].mxu1 %vm414_vm1, %v694_v26 }
  0x33   : > { %2118 = vmatpush3.msk.msra.mxu1 %vm439_vm0, %v1926_v61  ;;  %2168 = vmatmul.mubr.msk.f32.gmra.mrb[4].mxu0 %vm414_vm1, %v372_v6 }
  0x34   : > { %2108 = vmatprep.mubr.msk.f32.mxu1 %vm414_vm1, %v697_v35  ;;  %2170 = vmatprep.mubr.msk.f32.mxu0 %vm414_vm1, %v374_v15 }
  0x35   : > { %2201 = vmatprep.subr.msk.mxu1 %vm439_vm0, %v2385_v1 }
  0x36   : > { %2109 = vmatmul.mubr.msk.f32.gmra.mrb[2].mxu1 %vm414_vm1, %v700_v38 }
  0x37   : > { %2171 = vmatmul.mubr.msk.f32.gmra.mrb[6].mxu0 %vm414_vm1, %v376_v43  ;;  %2111 = vmatprep.mubr.msk.f32.mxu1 %vm414_vm1, %v703_v44 }
  0x38   : > { %2175 = vmatprep.mubr.msk.f32.mxu0 %vm414_vm1, %v2425_v5  ;;  %v386_v5 = vld [vmem:[%s2409_s15 + $0x80] sm:$0xff] }
  0x3a   : > { %2112 = vmatmul.mubr.msk.f32.gmra.mrb[4].mxu1 %vm414_vm1, %v706_v49 }
  0x3b   : > { %2176 = vmatmul.mubr.msk.f32.vlgmr.msra.gmra.mrb[0].mxu0 %vm414_vm1, %v2434_v9  ;;  %2114 = vmatprep.mubr.msk.f32.mxu1 %vm414_vm1, %v709_v51  ;;  %v377_v9 = vld [vmem:[%s2503_s30 + $0x88] sm:$0x1] }
  0x3c   : > { %2188 = vmatpush3.msk.msra.mxu0 %vm439_vm0, %v1976_v12  ;;  %2178 = vmatprep.mubr.msk.f32.mxu0 %vm414_vm1, %v2441_v11  ;;  %v408_v11 = vld [vmem:[%s2422_s21 + $0x50] sm:$0xff] }
  0x3e   : > { %2115 = vmatmul.mubr.msk.f32.gmra.mrb[6].mxu1 %vm414_vm1, %v712_v52 }
  0x3f   : > { %2179 = vmatmul.mubr.msk.f32.gmra.mrb[2].mxu0 %vm414_vm1, %v2459_v16  ;;  %2119 = vmatprep.mubr.msk.f32.mxu1 %vm414_vm1, %v2452_v14  ;;  %v1540_v14 = vrot.slane %v376_v43, 1  ;;  %v409_v16 = vld [vmem:[%s2422_s21 + $0x60] sm:$0xff] }
  0x40   : > { %2181 = vmatprep.mubr.msk.f32.mxu0 %vm414_vm1, %v2487_v30 }
  0x42   : > { %2120 = vmatmul.mubr.msk.f32.vlgmr.msra.gmra.mrb[0].mxu1 %vm414_vm1, %v2463_v19  ;;  %v1541_v19 = vrot.slane %v377_v9, 1 }
  0x43   : > { %2202 = vmatpush3.msk.msra.mxu1 %vm439_vm0, %v2385_v1  ;;  %2182 = vmatmul.mubr.msk.f32.gmra.mrb[4].mxu0 %vm414_vm1, %v2496_v34  ;;  %v407_v1 = vld [vmem:[%s2422_s21 + $0x40] sm:$0xff] }
  0x44   : > { %2122 = vmatprep.mubr.msk.f32.mxu1 %vm414_vm1, %v2470_v23  ;;  %2184 = vmatprep.mubr.msk.f32.mxu0 %vm414_vm1, %v2524_v45  ;;  %v410_v23 = vld [vmem:[%s2422_s21 + $0x70] sm:$0xff]  ;;  %v1986_v45 = vld [vmem:[%s2741_s5] ss:$0 sm:$0xff]  ;;  %s2706_s21 = scalar_lea.vmem %s2743_s7, %s1896_s25 }
  0x46   : > { %2123 = vmatmul.mubr.msk.f32.gmra.mrb[2].mxu1 %vm414_vm1, %v2478_v28  ;;  %v1542_v28 = vsel %vm688_vm2, %v1540_v14, %v1541_v19 }
  0x47   : > { %2185 = vmatmul.mubr.msk.f32.gmra.mrb[6].mxu0 %vm414_vm1, %v386_v5  ;;  %2125 = vmatprep.mubr.msk.f32.mxu1 %vm414_vm1, %v2490_v31 }
  0x48   : > { %2189 = vmatprep.mubr.msk.f32.mxu0 %vm414_vm1, %v694_v26 }
  0x4a   : > { %2126 = vmatmul.mubr.msk.f32.gmra.mrb[4].mxu1 %vm414_vm1, %v2508_v40 }
  0x4b   : > { %2190 = vmatmul.mubr.msk.f32.vlgmr.msra.gmra.mrb[0].mxu0 %vm414_vm1, %v697_v35  ;;  %2128 = vmatprep.mubr.msk.f32.mxu1 %vm414_vm1, %v2514_v42 }
  0x4c   : > { %2192 = vmatprep.mubr.msk.f32.mxu0 %vm414_vm1, %v700_v38 }
  0x4e   : > { %2129 = vmatmul.mubr.msk.f32.gmra.mrb[6].mxu1 %vm414_vm1, %v2534_v53 }
  0x4f   : > { %2193 = vmatmul.mubr.msk.f32.gmra.mrb[2].mxu0 %vm414_vm1, %v703_v44  ;;  %2139 = vmatprep.mubr.msk.f32.mxu1 %vm414_vm1, %v407_v1 }
  0x50   : > { %2195 = vmatprep.mubr.msk.f32.mxu0 %vm414_vm1, %v706_v49 }
  0x52   : > { %2140 = vmatmul.mubr.msk.f32.vlgmr.msra.gmra.mrb[4].mxu1 %vm414_vm1, %v408_v11 }
  0x53   : > { %2196 = vmatmul.mubr.msk.f32.gmra.mrb[4].mxu0 %vm414_vm1, %v709_v51  ;;  %2142 = vmatprep.mubr.msk.f32.mxu1 %vm414_vm1, %v409_v16 }
  0x54   : > { %2198 = vmatprep.mubr.msk.f32.mxu0 %vm414_vm1, %v712_v52 }
  0x56   : > { %2143 = vmatmul.mubr.msk.f32.gmra.mrb[6].mxu1 %vm414_vm1, %v410_v23 }
  0x57   : > { %2199 = vmatmul.mubr.msk.f32.gmra.mrb[6].mxu0 %vm414_vm1, %v1542_v28 }
 0x115   : > { %v2121_v30 = vpop.f32.mrb[0].mxu1 }
 0x116   : > { %v942_v31 = vpop.f32.mrb[1].mxu1 }
 0x119   : > { %v2124_v34 = vpop.f32.mrb[2].mxu1 }
 0x11a   : > { %v952_v40 = vpop.f32.mrb[3].mxu1 }
 0x11e   : > { %v2191_v42 = vpop.f32.mrb[0].mxu0 }
 0x11f   : > { %v2203_v53 = vadd.f32 %v2191_v42, %v2121_v30  ;;  %v1616_v54 = vpop.f32.mrb[1].mxu0 }
 0x120   : > { %v2204_v56 = vadd.f32 %v1616_v54, %v942_v31 }
 0x121   : > { %v1671_v57 = vmul.f32 %v2203_v53, %v1986_v45 }
 0x122   : > { %v1670_v58 = vmul.f32 %v2204_v56, %v1986_v45  ;;  %v2194_v59 = vpop.f32.mrb[2].mxu0 }
 0x123   : > { %v2670_v60 = vadd.f32 %v1987_v55, %v1671_v57  ;;  %v2205_v61 = vadd.f32 %v2194_v59, %v2124_v34  ;;  %v1626_v62 = vpop.f32.mrb[3].mxu0 }
 0x124   : > { %v2672_v63 = vadd.f32 %v1987_v55, %v1670_v58  ;;  %v2206_v0 = vadd.f32 %v1626_v62, %v952_v40 }
 0x125   : > { %v1702_v2 = vand.u32 2147483647, %v2670_v60  ;;  %v1673_v3 = vmul.f32 %v2205_v61, %v1986_v45  ;;  %v2141_v4 = vpop.f32.mrb[4].mxu1 }
 0x126   : > { %v1701_v6 = vand.u32 2147483647, %v2672_v63  ;;  %v1672_v7 = vmul.f32 %v2206_v0, %v1986_v45  ;;  %v2197_v8 = vpop.f32.mrb[4].mxu0  ;;  %v1104_v10 = vpop.f32.mrb[5].mxu1 }
 0x127   : > { %v1710_v12 = vsub.f32 0.0, %v1702_v2  ;;  %v2676_v13 = vadd.f32 %v1987_v55, %v1673_v3  ;;  %v2207_v15 = vadd.f32 %v2197_v8, %v2141_v4  ;;  %v1636_v17 = vpop.f32.mrb[5].mxu0  ;;  %v1694_v4 = vmax.f32 %v2670_v60, 0.0 }
 0x128   : > { %v1709_v18 = vsub.f32 0.0, %v1701_v6  ;;  %v2678_v20 = vadd.f32 %v1987_v55, %v1672_v7  ;;  %v2208_v21 = vadd.f32 %v1636_v17, %v1104_v10  ;;  %v1693_v8 = vmax.f32 %v2672_v63, 0.0 }
 0x129   : > { %v1719_v22 = vmul.f32 1.442695, %v1710_v12  ;;  %v1704_v24 = vand.u32 2147483647, %v2676_v13  ;;  %v1675_v25 = vmul.f32 %v2207_v15, %v1986_v45  ;;  %v2144_v26 = vpop.f32.mrb[6].mxu1 }
 0x12a   : > { %v1717_v27 = vmul.f32 1.442695, %v1709_v18  ;;  %v1703_v29 = vand.u32 2147483647, %v2678_v20  ;;  %v1674_v32 = vmul.f32 %v2208_v21, %v1986_v45  ;;  %v2200_v33 = vpop.f32.mrb[6].mxu0  ;;  %v1114_v38 = vpop.f32.mrb[7].mxu1 }
 0x12b   : > { %2275 = vpow2.f32 %v1719_v22  ;;  %v1712_v35 = vsub.f32 0.0, %v1704_v24  ;;  %v2682_v36 = vadd.f32 %v1987_v55, %v1675_v25  ;;  %v2209_v37 = vadd.f32 %v2200_v33, %v2144_v26  ;;  %v1646_v39 = vpop.f32.mrb[7].mxu0 }
 0x12c   : > { %2277 = vpow2.f32 %v1717_v27  ;;  %v1711_v41 = vsub.f32 0.0, %v1703_v29  ;;  %v2684_v43 = vadd.f32 %v1987_v55, %v1674_v32  ;;  %v2210_v44 = vadd.f32 %v1646_v39, %v1114_v38 }
 0x12d   : > { %v1723_v46 = vmul.f32 1.442695, %v1712_v35  ;;  %v1706_v47 = vand.u32 2147483647, %v2682_v36  ;;  %v1677_v48 = vmul.f32 %v2209_v37, %v1986_v45  ;;  %v1696_v22 = vmax.f32 %v2676_v13, 0.0 }
 0x12e   : > { %v1721_v49 = vmul.f32 1.442695, %v1711_v41  ;;  %v1705_v50 = vand.u32 2147483647, %v2684_v43  ;;  %v1676_v51 = vmul.f32 %v2210_v44, %v1986_v45  ;;  %v1695_v25 = vmax.f32 %v2678_v20, 0.0 }
 0x12f   : > { %2279 = vpow2.f32 %v1723_v46  ;;  %v1714_v52 = vsub.f32 0.0, %v1706_v47  ;;  %v2688_v5 = vadd.f32 %v1987_v55, %v1677_v48  ;;  %v1698_v35 = vmax.f32 %v2682_v36, 0.0 }
 0x130   : > { %2281 = vpow2.f32 %v1721_v49  ;;  %v1713_v1 = vsub.f32 0.0, %v1705_v50  ;;  %v2690_v9 = vadd.f32 %v1987_v55, %v1676_v51  ;;  %v1697_v38 = vmax.f32 %v2684_v43, 0.0 }
 0x131   : > { %v1727_v11 = vmul.f32 1.442695, %v1714_v52  ;;  %v1708_v14 = vand.u32 2147483647, %v2688_v5  ;;  %v1700_v47 = vmax.f32 %v2688_v5, 0.0 }
 0x132   : > { %v1725_v16 = vmul.f32 1.442695, %v1713_v1  ;;  %v1707_v19 = vand.u32 2147483647, %v2690_v9 }
 0x133   : > { %2283 = vpow2.f32 %v1727_v11  ;;  %v1716_v23 = vsub.f32 0.0, %v1708_v14  ;;  %v1699_v14 = vmax.f32 %v2690_v9, 0.0 }
 0x134   : > { %2285 = vpow2.f32 %v1725_v16  ;;  %v1715_v28 = vsub.f32 0.0, %v1707_v19 }
 0x135   : > { %v2276_v30 = vpop.eup %2275  ;;  %v1731_v31 = vmul.f32 1.442695, %v1716_v23 }
 0x136   : > { %v2278_v34 = vpop.eup %2277  ;;  %v1734_v40 = vadd.f32 1.0, %v2276_v30  ;;  %v1729_v42 = vmul.f32 1.442695, %v1715_v28 }
 0x137   : > { %v1733_v45 = vadd.f32 1.0, %v2278_v34  ;;  %2287 = vpow2.f32 %v1731_v31 }
 0x138   : > { %2289 = vlog2.f32 %v1734_v40 }
 0x139   : > { %v2280_v53 = vpop.eup %2279  ;;  %2291 = vlog2.f32 %v1733_v45 }
 0x13a   : > { %v2282_v54 = vpop.eup %2281  ;;  %v1736_v55 = vadd.f32 1.0, %v2280_v53  ;;  %2293 = vpow2.f32 %v1729_v42 }
 0x13b   : > { %v1735_v56 = vadd.f32 1.0, %v2282_v54 }
 0x13c   : > { %2295 = vlog2.f32 %v1736_v55 }
 0x13d   : > { %v2284_v57 = vpop.eup %2283  ;;  %2297 = vlog2.f32 %v1735_v56 }
 0x13e   : > { %v2286_v58 = vpop.eup %2285  ;;  %v1738_v59 = vadd.f32 1.0, %v2284_v57 }
 0x13f   : > { %v1737_v61 = vadd.f32 1.0, %v2286_v58 }
 0x140   : > { %2299 = vlog2.f32 %v1738_v59 }
 0x141   : > { %v2288_v62 = vpop.eup %2287  ;;  %2301 = vlog2.f32 %v1737_v61 }
 0x142   : > { %v2290_v0 = vpop.eup %2289  ;;  %v1740_v2 = vadd.f32 1.0, %v2288_v62 }
 0x143   : > { %v2292_v3 = vpop.eup %2291  ;;  %v1744_v6 = vmul.f32 0.6931472, %v2290_v0 }
 0x144   : > { %v2294_v7 = vpop.eup %2293  ;;  %v1742_v10 = vmul.f32 0.6931472, %v2292_v3  ;;  %2303 = vlog2.f32 %v1740_v2 }
 0x145   : > { %v1758_v12 = vadd.f32 %v1744_v6, %v1694_v4  ;;  %v1739_v15 = vadd.f32 1.0, %v2294_v7 }
 0x146   : > { %v2296_v17 = vpop.eup %2295  ;;  %v1757_v18 = vadd.f32 %v1742_v10, %v1693_v8 }
 0x147   : > { %v2298_v21 = vpop.eup %2297  ;;  %2305 = vtanh.f32 %v1758_v12  ;;  %v1748_v24 = vmul.f32 0.6931472, %v2296_v17 }
 0x148   : > { %2307 = vtanh.f32 %v1757_v18  ;;  %v1746_v26 = vmul.f32 0.6931472, %v2298_v21 }
 0x149   : > { %v1760_v27 = vadd.f32 %v1748_v24, %v1696_v22  ;;  %2309 = vlog2.f32 %v1739_v15 }
 0x14a   : > { %v2300_v29 = vpop.eup %2299  ;;  %v1759_v32 = vadd.f32 %v1746_v26, %v1695_v25 }
 0x14b   : > { %v2302_v33 = vpop.eup %2301  ;;  %2311 = vtanh.f32 %v1760_v27  ;;  %v1752_v37 = vmul.f32 0.6931472, %v2300_v29 }
 0x14c   : > { %2313 = vtanh.f32 %v1759_v32  ;;  %v1750_v39 = vmul.f32 0.6931472, %v2302_v33 }
 0x14d   : > { %v1762_v41 = vadd.f32 %v1752_v37, %v1698_v35 }
 0x14e   : > { %v2304_v44 = vpop.eup %2303  ;;  %v1761_v46 = vadd.f32 %v1750_v39, %v1697_v38 }
 0x14f   : > { %2315 = vtanh.f32 %v1762_v41  ;;  %v1756_v48 = vmul.f32 0.6931472, %v2304_v44 }
 0x150   : > { %2317 = vtanh.f32 %v1761_v46 }
 0x151   : > { %v2306_v49 = vpop.eup %2305  ;;  %v1764_v50 = vadd.f32 %v1756_v48, %v1700_v47 }
 0x152   : > { %v2308_v51 = vpop.eup %2307  ;;  %v1774_v52 = vmul.f32 %v2306_v49, %v2670_v60 }
 0x153   : > { %v2310_v1 = vpop.eup %2309  ;;  %v1773_v11 = vmul.f32 %v2308_v51, %v2672_v63  ;;  %2319 = vtanh.f32 %v1764_v50 }
 0x154   : > { %1783 = vst.msk [vmem:[%s2706_s21 + $0x8] sm:$0xff] %vm1781_vm3, %v1774_v52  ;;  %v1754_v16 = vmul.f32 0.6931472, %v2310_v1 }
 0x155   : > { %v2312_v19 = vpop.eup %2311  ;;  %1782 = vst.msk [vmem:[%s2706_s21] sm:$0xff] %vm1781_vm3, %v1773_v11 }
 0x156   : > { %v2314_v23 = vpop.eup %2313  ;;  %v1776_v28 = vmul.f32 %v2312_v19, %v2676_v13  ;;  %v1763_v60 = vadd.f32 %v1754_v16, %v1699_v14 }
 0x157   : > { %v1775_v30 = vmul.f32 %v2314_v23, %v2678_v20 }
 0x158   : > { %1785 = vst.msk [vmem:[%s2706_s21 + $0x18] sm:$0xff] %vm1781_vm3, %v1776_v28  ;;  %2321 = vtanh.f32 %v1763_v60 }
 0x159   : > { %v2316_v63 = vpop.eup %2315  ;;  %1784 = vst.msk [vmem:[%s2706_s21 + $0x10] sm:$0xff] %vm1781_vm3, %v1775_v30 }
 0x15a   : > { %v2318_v31 = vpop.eup %2317  ;;  %v1778_v34 = vmul.f32 %v2316_v63, %v2682_v36 }
 0x15b   : > { %v1777_v40 = vmul.f32 %v2318_v31, %v2684_v43 }
 0x15c   : > { %1787 = vst.msk [vmem:[%s2706_s21 + $0x28] sm:$0xff] %vm1781_vm3, %v1778_v34 }
 0x15d   : > { %v2320_v42 = vpop.eup %2319  ;;  %1786 = vst.msk [vmem:[%s2706_s21 + $0x20] sm:$0xff] %vm1781_vm3, %v1777_v40 }
 0x15e   : > { %v1780_v13 = vmul.f32 %v2320_v42, %v2688_v5 }
 0x160   : > { %1789 = vst.msk [vmem:[%s2706_s21 + $0x38] sm:$0xff] %vm1781_vm3, %v1780_v13 }
 0x162   : > { %v2322_v20 = vpop.eup %2321 }
 0x163   : > { %v1779_v45 = vmul.f32 %v2322_v20, %v2690_v9 }
 0x165   : > { %1788 = vst.msk [vmem:[%s2706_s21 + $0x30] sm:$0xff] %vm1781_vm3, %v1779_v45 }
 0x166 PF: > { %s17_s24 = sadd.s32 1, %s2329_s24  }
 0x167   : > { %p14_p5 = scmp.ge.s32.totalorder %s17_s24, 4  }
 0x169   :  { %16 = sbr.rel (!%p14_p5) target bundleno = 1 (0x1), region = 95 }

</bundles_post_ra>
